<compile_context>
chip_gen: v7x
topology: tpu7x:2x2x1
jax: 0.10.0
libtpu: 0.0.40
codegen_flags: <defaults>
</compile_context>

<pallas_src>
import jax
import jax.numpy as jnp
from jax.experimental import pallas as pl
from jax.experimental.pallas import tpu as pltpu

_SUBLANE = 8
_LANE = 128
_MIB = 1024 * 1024


def _round_up(n, m):
    return ((n + m - 1) // m) * m


def _pick_vmem_limit_bytes():
    """Per-generation scoped-VMEM limit with headroom (v5e/v6e: 64 MiB of
    128 MiB physical; v7x: ~45 MiB of 64 MiB physical)."""
    cap = None
    try:
        cap = getattr(pltpu.get_tpu_info(), "vmem_capacity_bytes", None)
    except Exception:
        cap = None
    if not cap:
        cap = 64 * _MIB  # conservative fallback (v7x-sized)
    return int(min(max(cap * 7 // 10, 32 * _MIB), 64 * _MIB))


def _choose_block_batch(B, F, itemsize, vmem_limit_bytes):
    """Largest batch tile whose double-buffered, lane-padded VMEM footprint
    fits under the limit. Lane padding: a (TB, F) tile occupies
    TB * round_up(F, 128) * itemsize bytes in VMEM regardless of F."""
    padded_row_bytes = _round_up(max(F, 1), _LANE) * itemsize
    # 2 buffers for the pipelined x tile + small margin for out/weight/scratch.
    per_buffer_budget = max((vmem_limit_bytes - 6 * _MIB) // 2, 2 * _MIB)
    rows = per_buffer_budget // padded_row_bytes
    # TODO(synk): if F is so wide that even an 8-row full-F tile exceeds VMEM
    # (~>1.5M f32 features), add an F reduction grid axis ("arbitrary") with a
    # VMEM accumulator + pl.when init/finalize instead of a full-F block.
    rows = max(rows, _SUBLANE)

    if rows >= B:
        # Whole batch fits in one tile.
        if B >= 8192:
            # Split into 2 tiles so the "parallel" axis can feed both
            # TensorCores on v7x (tiles stay multi-MiB at this size).
            return _round_up(pl.cdiv(B, 2), _LANE)
        return max(B, 1)

    # Multi-tile: keep a lane/sublane friendly granule.
    if rows >= _LANE:
        return (rows // _LANE) * _LANE
    return (rows // _SUBLANE) * _SUBLANE


def _logreg_kernel(x_ref, w_ref, b_ref, o_ref):
    # x_ref: (TB, F) VMEM, native dtype (streaming operand)
    # w_ref: (1, F)  VMEM, resident across grid steps
    # b_ref: (1,)    SMEM scalar
    # o_ref: (TB, 1) VMEM
    x = x_ref[...].astype(jnp.float32)
    w = w_ref[...].astype(jnp.float32)

    # VPU GEMV in exact f32: broadcast multiply + reduce over the feature
    # (lane) axis. Keeps the big x tile off the MXU weight path and avoids
    # any bf16 multi-pass / transpose; per-row reduction so garbage rows of a
    # partial boundary block cannot pollute valid rows.
    z = jnp.sum(x * w, axis=1, keepdims=True) + b_ref[0]

    # Numerically stable sigmoid: exp(-|z|) on the EUP, select on the VPU.
    e = jnp.exp(-jnp.abs(z))
    sig = jnp.where(z >= 0.0, 1.0 / (1.0 + e), e / (1.0 + e))
    o_ref[...] = sig.astype(o_ref.dtype)


def logistic_regression_forward(x, weight, bias, *, block_batch=None):
    """sigmoid(x @ weight.T + bias).

    x:      (B, F), any float dtype (streamed in native dtype)
    weight: (1, F)  PyTorch nn.Linear layout (no transpose needed)
    bias:   (1,)
    returns (B, 1) float32
    """
    B, F = x.shape
    itemsize = jnp.dtype(x.dtype).itemsize
    vmem_limit = _pick_vmem_limit_bytes()

    if block_batch is None:
        block_batch = _choose_block_batch(B, F, itemsize, vmem_limit)
    if block_batch >= B:
        block_batch = B
    elif block_batch % _SUBLANE != 0:
        block_batch = _round_up(block_batch, _SUBLANE)

    # No input padding: grid = cdiv(B, TB); the last block is partial and
    # Pallas only writes back its valid rows.
    grid = (pl.cdiv(B, block_batch),)

    w = weight.reshape(1, F)                    # lane-dense, resident weight
    b = bias.reshape(1).astype(jnp.float32)     # scalar in SMEM

    out = pl.pallas_call(
        _logreg_kernel,
        out_shape=jax.ShapeDtypeStruct((B, 1), jnp.float32),
        grid_spec=pltpu.PrefetchScalarGridSpec(
            num_scalar_prefetch=0,
            grid=grid,
            in_specs=[
                pl.BlockSpec((block_batch, F), lambda i: (i, 0)),   # x tile
                pl.BlockSpec((1, F), lambda i: (0, 0)),             # weight (resident)
                pl.BlockSpec(memory_space=pltpu.MemorySpace.SMEM),  # bias scalar
            ],
            out_specs=pl.BlockSpec((block_batch, 1), lambda i: (i, 0)),
        ),
        compiler_params=pltpu.CompilerParams(
            dimension_semantics=("parallel",),   # v7x dual-TC sharding
            vmem_limit_bytes=vmem_limit,         # per-generation, with headroom
        ),
    )(x, w, b)

    return out


if __name__ == "__main__":
    key = jax.random.PRNGKey(0)
    kx, kw, kb, kx2, kw2, kb2 = jax.random.split(key, 6)

    # Small shapes consistent with the module: batch=8, n_input_features=32.
    n_input_features = 32
    batch = 8
    x = jax.random.normal(kx, (batch, n_input_features), dtype=jnp.float32)
    weight = jax.random.normal(kw, (1, n_input_features), dtype=jnp.float32) * 0.1
    bias = jax.random.normal(kb, (1,), dtype=jnp.float32) * 0.1

    y = jax.block_until_ready(logistic_regression_forward(x, weight, bias))
    ref = jax.nn.sigmoid(jnp.sum(x * weight, axis=-1, keepdims=True) + bias)
    assert y.shape == (batch, 1)
    assert jnp.allclose(y, ref, atol=1e-5), "mismatch vs reference (single tile)"

    # Exercise the multi-tile path with a ragged batch (partial boundary
    # block, no input padding): 300 = 2*128 + 44.
    B2, F2 = 300, 64
    x2 = jax.random.normal(kx2, (B2, F2), dtype=jnp.float32)
    w2 = jax.random.normal(kw2, (1, F2), dtype=jnp.float32) * 0.1
    b2 = jax.random.normal(kb2, (1,), dtype=jnp.float32) * 0.1
    y2 = jax.block_until_ready(
        logistic_regression_forward(x2, w2, b2, block_batch=128))
    ref2 = jax.nn.sigmoid(jnp.sum(x2 * w2, axis=-1, keepdims=True) + b2)
    assert y2.shape == (B2, 1)
    assert jnp.allclose(y2, ref2, atol=1e-5), "mismatch vs reference (tiled/ragged)"

    print("KERNEL_OK")
</pallas_src>

<mosaic_0001>
module attributes {stable_mosaic.version = 11 : i64} {
  func.func @_logreg_kernel(%arg0: i32, %arg1: memref<8x32xf32, #tpu.memory_space<vmem>>, %arg2: memref<1x32xf32, #tpu.memory_space<vmem>>, %arg3: memref<1xf32, #tpu.memory_space<smem>>, %arg4: memref<8x1xf32, #tpu.memory_space<vmem>>) attributes {dimension_semantics = [#tpu.dimension_semantics<parallel>], iteration_bounds = array<i64: 1>, scalar_prefetch = 0 : i64, scratch_operands = 0 : i64, tpu.core_type = #tpu.core_type<tc>, window_params = [{transform_indices = @transform_0, window_bounds = array<i64: 8, 32>}, {pipeline_mode = #tpu.pipeline_mode<synchronous>, transform_indices = @transform_1, window_bounds = array<i64: 1, 32>}, {transform_indices = @transform_2, window_bounds = array<i64: 1>}, {transform_indices = @transform_3, window_bounds = array<i64: 8, 1>}]} {
    %c0 = arith.constant 0 : index
    %c0_0 = arith.constant 0 : index
    %0 = vector.load %arg1[%c0, %c0_0] : memref<8x32xf32, #tpu.memory_space<vmem>>, vector<8x32xf32>
    %c0_1 = arith.constant 0 : index
    %c0_2 = arith.constant 0 : index
    %1 = vector.load %arg2[%c0_1, %c0_2] : memref<1x32xf32, #tpu.memory_space<vmem>>, vector<1x32xf32>
    %2 = vector.broadcast %1 : vector<1x32xf32> to vector<8x32xf32>
    %3 = arith.mulf %0, %2 : vector<8x32xf32>
    %cst = arith.constant dense<0.000000e+00> : vector<8xf32>
    %4 = vector.multi_reduction <add>, %3, %cst [1] : vector<8x32xf32> to vector<8xf32>
    %5 = vector.shape_cast %4 : vector<8xf32> to vector<8x1xf32>
    %c0_3 = arith.constant 0 : index
    %6 = memref.load %arg3[%c0_3] : memref<1xf32, #tpu.memory_space<smem>>
    %7 = vector.broadcast %6 : f32 to vector<8x1xf32>
    %8 = arith.addf %5, %7 : vector<8x1xf32>
    %9 = math.absf %8 : vector<8x1xf32>
    %cst_4 = arith.constant 0.000000e+00 : f32
    %10 = vector.broadcast %cst_4 : f32 to vector<8x1xf32>
    %11 = arith.subf %10, %9 : vector<8x1xf32>
    %12 = math.exp %11 : vector<8x1xf32>
    %cst_5 = arith.constant 0.000000e+00 : f32
    %13 = vector.broadcast %cst_5 : f32 to vector<8x1xf32>
    %14 = arith.cmpf oge, %8, %13 : vector<8x1xf32>
    %cst_6 = arith.constant 1.000000e+00 : f32
    %15 = vector.broadcast %cst_6 : f32 to vector<8x1xf32>
    %16 = arith.addf %15, %12 : vector<8x1xf32>
    %cst_7 = arith.constant 1.000000e+00 : f32
    %17 = vector.broadcast %cst_7 : f32 to vector<8x1xf32>
    %18 = arith.divf %17, %16 : vector<8x1xf32>
    %cst_8 = arith.constant 1.000000e+00 : f32
    %19 = vector.broadcast %cst_8 : f32 to vector<8x1xf32>
    %20 = arith.addf %19, %12 : vector<8x1xf32>
    %21 = arith.divf %12, %20 : vector<8x1xf32>
    %22 = arith.select %14, %18, %21 : vector<8x1xi1>, vector<8x1xf32>
    %c0_9 = arith.constant 0 : index
    %c0_10 = arith.constant 0 : index
    %23 = vector.load %arg4[%c0_9, %c0_10] : memref<8x1xf32, #tpu.memory_space<vmem>>, vector<8x1xf32>
    tpu.vector_store %arg4[%c0_9, %c0_10], %22 {strides = array<i32>} : memref<8x1xf32, #tpu.memory_space<vmem>>, vector<8x1xf32>,
    return
  }
  func.func @transform_0(%arg0: i32) -> (i32, i32) {
    %c0_i32 = arith.constant 0 : i32
    %c0_i32_0 = arith.constant 0 : i32
    return %arg0, %c0_i32 : i32, i32
  }
  func.func @transform_1(%arg0: i32) -> (i32, i32) {
    %c0_i32 = arith.constant 0 : i32
    %c0_i32_0 = arith.constant 0 : i32
    %c0_i32_1 = arith.constant 0 : i32
    return %c0_i32, %c0_i32_0 : i32, i32
  }
  func.func @transform_2(%arg0: i32) -> i32 {
    %c0_i32 = arith.constant 0 : i32
    %c0_i32_0 = arith.constant 0 : i32
    return %c0_i32 : i32
  }
  func.func @transform_3(%arg0: i32) -> (i32, i32) {
    %c0_i32 = arith.constant 0 : i32
    %c0_i32_0 = arith.constant 0 : i32
    return %arg0, %c0_i32 : i32, i32
  }
}

</mosaic_0001>

<bundles_post_ra>
// kernel: tpu_custom_call.1
= control target key start
LH: loop header
LB: loop body
LE: loop exit
PB: predicated region body
PF: predicated region fallthrough
CT: control target
= control target key end

     0   :  { %9 = vsyncpa [#allocation4], 0  ;;  %s90_s12 = smov [#allocation3]   ;;  %s132_s0 = inlined_call_operand.hbm [shape: f32[8,32], index: 0, kind: input, shape index: {}]   ;;  %s133_s1 = inlined_call_operand.vmem [shape: f32[1,32], index: 1, kind: input, shape index: {}]   ;;  %s134_s2 = inlined_call_operand.<no memory space> [shape: f32[1], index: 2, kind: input, shape index: {}]   ;;  %s135_s3 = inlined_call_operand.vmem [shape: f32[8,1], index: 3, kind: output, shape index: {}]  }
   0x1   :  { %s16_s13 = sshll.u32 %s90_s12, 4  ;;  %s66_s16 = scalar_lea.hbm %s132_s0, 128  ;;  %s17_s13 = int_to_ptr.vmem [resolvable:$true] %s16_s13 }
   0x2   :  { %p67_p0 = scmp.ne.s32.totalorder %s132_s0, %s66_s16  ;;  %p70_p1 = scmp.lt.u32.totalorder %s66_s16, %s132_s0 }
   0x4   :  { %p72_p2 = pnand %p70_p1, %p67_p0 }
   0x6   :  { %75 = shalt.err (!%p72_p2)
}
   0x7   :  { %s76_s21 = scalar_lea.vmem %s17_s13, 128  ;;  %p81_p4 = scmp.lt.s32.totalorder %s17_s13, %s17_s13 }
   0x8   :  { %p77_p3 = scmp.ne.s32.totalorder %s17_s13, %s76_s21  ;;  %p82_p5 = scmp.lt.s32.totalorder %s76_s21, %s76_s21 }
   0xa   :  { %p83_p6 = por %p82_p5, %p81_p4 }
   0xc   :  { %p84_p7 = pnand %p83_p6, %p77_p3 }
   0xe   :  { %87 = shalt.err (!%p84_p7)
}
   0xf   :  { %19 = dma.hbm_to_vmem [thread:$0]  %s132_s0, 128, %s17_s13, [#allocation4]  }
  0x10   :  { %88 = dma.done.wait [#allocation4], 128  }
  0x11   :  { %89 = vsyncadd [#allocation4], 4294967168  ;;  %v27_v0 = vld [vmem:[#allocation3] sm:$0xff]  ;;  %vm36_vm0 = vcmask 261120   ;;  %v41_v4 = vstv %s134_s2  ;;  %vm53_vm1 = vcmask 7168  }
  0x12   :  { %v60_v1 = vld [vmem:[%s133_s1] ss:$0 sm:$0xff] }
  0x13   :  { %v35_v2 = vmul.f32 %v60_v1, %v27_v0 }
  0x15   :  { %v37_v3 = vsel %vm36_vm0, %v35_v2, 0.0 }
  0x16   :  { %38 = vadd.xlane.f32.xlu0 %v37_v3 }
  0xa3   :  { %v39_v5 = vpop.xlane.xlu0 %38 }
  0xa4   :  { %v42_v6 = vadd.f32 %v41_v4, %v39_v5 }
  0xa6   :  { %v43_v7 = vand.u32 2147483647, %v42_v6  ;;  %vm47_vm2 = vcmp.ge.f32.partialorder %v42_v6, 0.0 }
  0xa8   :  { %v44_v8 = vsub.f32 0.0, %v43_v7 }
  0xaa   :  { %v45_v9 = vmul.f32 1.442695, %v44_v8 }
  0xac   :  { %62 = vpow2.f32 %v45_v9 }
  0xb6   :  { %v63_v10 = vpop.eup %62 }
  0xb7   :  { %v48_v11 = vadd.f32 1.0, %v63_v10 }
  0xb9   :  { %64 = vrcp.f32 %v48_v11 }
  0xc3   :  { %v65_v12 = vpop.eup %64 }
  0xc4   :  { %v51_v13 = vmul.f32 %v65_v12, %v63_v10 }
  0xc6   :  { %v52_v14 = vsel %vm47_vm2, %v65_v12, %v51_v13 }
  0xc7   :  { %54 = vst.msk [vmem:[%s135_s3] sm:$0xff] %vm53_vm1, %v52_v14 }
  0xc8   :  { %59 = vsyncpa [#allocation4], 1 }

</bundles_post_ra>
